<compile_context>
chip_gen: v7x
topology: tpu7x:2x2x1
jax: 0.10.0
libtpu: 0.0.40
codegen_flags: <defaults>
</compile_context>

<pallas_src>
import functools

import jax
import jax.numpy as jnp
from jax.experimental import pallas as pl
from jax.experimental.pallas import tpu as pltpu


def _round_up(x, m):
    return (x + m - 1) // m * m


def _projection_kernel(x_ref, scale_ref, shift_ref,
                       w1_ref, b1_ref, w2_ref, b2_ref,
                       w3_ref, b3_ref, w4_ref, b4_ref,
                       o_ref, *, use_bn, final_activation):
    x = x_ref[...].astype(jnp.float32)

    if use_bn:
        # BN stats were computed over the full batch in the wrapper and folded
        # into a per-feature affine, so this is tile-local and exact.
        x = x * scale_ref[...] + shift_ref[...]

    def layer(h, w_ref, b_ref, relu):
        y = jnp.dot(h.astype(jnp.bfloat16), w_ref[...],
                    preferred_element_type=jnp.float32) + b_ref[...]
        return jnp.maximum(y, 0.0) if relu else y

    h = layer(x, w1_ref, b1_ref, True)
    h = layer(h, w2_ref, b2_ref, True)
    h = layer(h, w3_ref, b3_ref, True)
    h = layer(h, w4_ref, b4_ref, final_activation)

    o_ref[...] = h.astype(o_ref.dtype)


def projection_forward(x, params, *, use_bn, final_activation, tile_b=256):
    """x: [B, F] float32. params: dict with gamma, beta, w1..w4, b1..b4."""
    B, F = x.shape
    H = params["w1"].shape[1]
    E = params["w4"].shape[1]

    # Pad features to lane width (128) for full-width MXU tiles and
    # lane-dense (unmasked) stores.
    Fp = _round_up(F, 128)
    Hp = _round_up(H, 128)
    Ep = _round_up(E, 128)

    # Batch tile: largest multiple of 8 up to `tile_b` that covers B.
    TILE_B = min(tile_b, _round_up(B, 8))
    Bp = _round_up(B, TILE_B)
    n_tiles = Bp // TILE_B

    # --- BatchNorm1d (training-mode) stats over the real batch, wrapper-side,
    # folded into per-feature scale/shift so the kernel stays batch-tileable.
    if use_bn:
        mean = jnp.mean(x, axis=0)
        var = jnp.mean(jnp.square(x - mean[None, :]), axis=0)  # biased var
        scale = params["gamma"] * jax.lax.rsqrt(var + 1e-5)
        shift = params["beta"] - mean * scale
    else:
        scale = jnp.ones((F,), jnp.float32)
        shift = jnp.zeros((F,), jnp.float32)

    def pad2(a, r, c):
        return jnp.pad(a, ((0, r - a.shape[0]), (0, c - a.shape[1])))

    def pad_row(a, c):
        a = a.reshape(1, -1)
        return jnp.pad(a, ((0, 0), (0, c - a.shape[1])))

    w_dtype = jnp.bfloat16  # full-rate MXU, halves resident-weight VMEM

    xp = pad2(x, Bp, Fp)
    scale_p = pad_row(scale, Fp)
    shift_p = pad_row(shift, Fp)
    w1 = pad2(params["w1"], Fp, Hp).astype(w_dtype)
    w2 = pad2(params["w2"], Hp, Hp).astype(w_dtype)
    w3 = pad2(params["w3"], Hp, Hp).astype(w_dtype)
    w4 = pad2(params["w4"], Hp, Ep).astype(w_dtype)
    b1 = pad_row(params["b1"], Hp)
    b2 = pad_row(params["b2"], Hp)
    b3 = pad_row(params["b3"], Hp)
    b4 = pad_row(params["b4"], Ep)

    inputs = (xp, scale_p, shift_p, w1, b1, w2, b2, w3, b3, w4, b4)

    # VMEM budget: double-buffered weights/biases (resident) + double-buffered
    # x/out tiles + intermediate activations, with headroom.
    weight_bytes = 2 * ((Fp * Hp + 2 * Hp * Hp + Hp * Ep) * 2)
    small_bytes = 2 * ((3 * Hp + Ep + 2 * Fp) * 4)
    act_bytes = TILE_B * (2 * Fp + 2 * Ep + 4 * Hp) * 4
    vmem_bytes = int(1.5 * (weight_bytes + small_bytes + act_bytes)) + (4 << 20)
    # TODO(synk): for H large enough that resident weights exceed ~64 MiB
    # (v7x VMEM), tile the hidden dimension as well.
    vmem_bytes = min(vmem_bytes, 100 * 1024 * 1024)

    kernel = functools.partial(_projection_kernel,
                               use_bn=use_bn,
                               final_activation=final_activation)

    grid_spec = pltpu.PrefetchScalarGridSpec(
        num_scalar_prefetch=0,
        grid=(n_tiles,),
        in_specs=[
            pl.BlockSpec((TILE_B, Fp), lambda i: (i, 0)),   # x tile (pipelined)
            pl.BlockSpec((1, Fp), lambda i: (0, 0)),        # scale (resident)
            pl.BlockSpec((1, Fp), lambda i: (0, 0)),        # shift (resident)
            pl.BlockSpec((Fp, Hp), lambda i: (0, 0)),       # w1 (resident)
            pl.BlockSpec((1, Hp), lambda i: (0, 0)),        # b1
            pl.BlockSpec((Hp, Hp), lambda i: (0, 0)),       # w2
            pl.BlockSpec((1, Hp), lambda i: (0, 0)),        # b2
            pl.BlockSpec((Hp, Hp), lambda i: (0, 0)),       # w3
            pl.BlockSpec((1, Hp), lambda i: (0, 0)),        # b3
            pl.BlockSpec((Hp, Ep), lambda i: (0, 0)),       # w4
            pl.BlockSpec((1, Ep), lambda i: (0, 0)),        # b4
        ],
        out_specs=pl.BlockSpec((TILE_B, Ep), lambda i: (i, 0)),
    )

    out_padded = pl.pallas_call(
        kernel,
        out_shape=jax.ShapeDtypeStruct((Bp, Ep), jnp.float32),
        grid_spec=grid_spec,
        compiler_params=pltpu.CompilerParams(
            dimension_semantics=("parallel",),   # megacore-shardable on v7x
            vmem_limit_bytes=vmem_bytes,
        ),
    )(*inputs)

    return out_padded[:B, :E]


def init_params(key, feature_dim, hidden_dim, embed_dim):
    """Deterministic PyTorch-style init (uniform(-1/sqrt(fan_in), +1/sqrt(fan_in)))."""
    def linear(k, fan_in, fan_out):
        kw, kb = jax.random.split(k)
        bound = 1.0 / jnp.sqrt(fan_in)
        # stored as [in, out] (transposed vs. PyTorch's [out, in])
        w = jax.random.uniform(kw, (fan_in, fan_out), jnp.float32, -bound, bound)
        b = jax.random.uniform(kb, (fan_out,), jnp.float32, -bound, bound)
        return w, b

    k1, k2, k3, k4 = jax.random.split(key, 4)
    w1, b1 = linear(k1, feature_dim, hidden_dim)
    w2, b2 = linear(k2, hidden_dim, hidden_dim)
    w3, b3 = linear(k3, hidden_dim, hidden_dim)
    w4, b4 = linear(k4, hidden_dim, embed_dim)
    return {
        "gamma": jnp.ones((feature_dim,), jnp.float32),   # BatchNorm1d weight init
        "beta": jnp.zeros((feature_dim,), jnp.float32),   # BatchNorm1d bias init
        "w1": w1, "b1": b1, "w2": w2, "b2": b2,
        "w3": w3, "b3": b3, "w4": w4, "b4": b4,
    }


def reference_forward(x, params, *, use_bn, final_activation):
    """Pure-JAX reference mirroring the kernel's bf16-weight / f32-accumulate math."""
    h = x
    if use_bn:
        mean = jnp.mean(h, axis=0)
        var = jnp.mean(jnp.square(h - mean[None, :]), axis=0)
        scale = params["gamma"] * jax.lax.rsqrt(var + 1e-5)
        shift = params["beta"] - mean * scale
        h = h * scale[None, :] + shift[None, :]

    def lin(h, w, b):
        return jnp.dot(h.astype(jnp.bfloat16), w.astype(jnp.bfloat16),
                       preferred_element_type=jnp.float32) + b

    h = jnp.maximum(lin(h, params["w1"], params["b1"]), 0.0)
    h = jnp.maximum(lin(h, params["w2"], params["b2"]), 0.0)
    h = jnp.maximum(lin(h, params["w3"], params["b3"]), 0.0)
    h = lin(h, params["w4"], params["b4"])
    if final_activation:
        h = jnp.maximum(h, 0.0)
    return h


if __name__ == "__main__":
    feature_dim, hidden_dim, embed_dim = 32, 64, 16
    batch = 8

    key = jax.random.PRNGKey(0)
    kx, kp = jax.random.split(key)
    x = jax.random.normal(kx, (batch, feature_dim), jnp.float32)
    params = init_params(kp, feature_dim, hidden_dim, embed_dim)

    for use_bn, final_activation in ((True, False), (False, True)):
        out = projection_forward(x, params, use_bn=use_bn,
                                 final_activation=final_activation)
        out = jax.block_until_ready(out)
        ref = reference_forward(x, params, use_bn=use_bn,
                                final_activation=final_activation)
        assert out.shape == (batch, embed_dim)
        assert jnp.allclose(out, ref, atol=1e-3, rtol=1e-3), (
            f"mismatch (use_bn={use_bn}, final_activation={final_activation}): "
            f"max abs err = {float(jnp.max(jnp.abs(out - ref)))}")

    print("KERNEL_OK")
</pallas_src>

<mosaic_0001>
module attributes {stable_mosaic.version = 11 : i64} {
  func.func @_projection_kernel(%arg0: i32, %arg1: memref<8x128xf32, #tpu.memory_space<vmem>>, %arg2: memref<1x128xf32, #tpu.memory_space<vmem>>, %arg3: memref<1x128xf32, #tpu.memory_space<vmem>>, %arg4: memref<128x128xbf16, #tpu.memory_space<vmem>>, %arg5: memref<1x128xf32, #tpu.memory_space<vmem>>, %arg6: memref<128x128xbf16, #tpu.memory_space<vmem>>, %arg7: memref<1x128xf32, #tpu.memory_space<vmem>>, %arg8: memref<128x128xbf16, #tpu.memory_space<vmem>>, %arg9: memref<1x128xf32, #tpu.memory_space<vmem>>, %arg10: memref<128x128xbf16, #tpu.memory_space<vmem>>, %arg11: memref<1x128xf32, #tpu.memory_space<vmem>>, %arg12: memref<8x128xf32, #tpu.memory_space<vmem>>) attributes {dimension_semantics = [#tpu.dimension_semantics<parallel>], iteration_bounds = array<i64: 1>, scalar_prefetch = 0 : i64, scratch_operands = 0 : i64, tpu.core_type = #tpu.core_type<tc>, window_params = [{transform_indices = @transform_0, window_bounds = array<i64: 8, 128>}, {pipeline_mode = #tpu.pipeline_mode<synchronous>, transform_indices = @transform_1, window_bounds = array<i64: 1, 128>}, {pipeline_mode = #tpu.pipeline_mode<synchronous>, transform_indices = @transform_2, window_bounds = array<i64: 1, 128>}, {pipeline_mode = #tpu.pipeline_mode<synchronous>, transform_indices = @transform_3, window_bounds = array<i64: 128, 128>}, {pipeline_mode = #tpu.pipeline_mode<synchronous>, transform_indices = @transform_4, window_bounds = array<i64: 1, 128>}, {pipeline_mode = #tpu.pipeline_mode<synchronous>, transform_indices = @transform_5, window_bounds = array<i64: 128, 128>}, {pipeline_mode = #tpu.pipeline_mode<synchronous>, transform_indices = @transform_6, window_bounds = array<i64: 1, 128>}, {pipeline_mode = #tpu.pipeline_mode<synchronous>, transform_indices = @transform_7, window_bounds = array<i64: 128, 128>}, {pipeline_mode = #tpu.pipeline_mode<synchronous>, transform_indices = @transform_8, window_bounds = array<i64: 1, 128>}, {pipeline_mode = #tpu.pipeline_mode<synchronous>, transform_indices = @transform_9, window_bounds = array<i64: 128, 128>}, {pipeline_mode = #tpu.pipeline_mode<synchronous>, transform_indices = @transform_10, window_bounds = array<i64: 1, 128>}, {transform_indices = @transform_11, window_bounds = array<i64: 8, 128>}]} {
    %c0 = arith.constant 0 : index
    %c0_0 = arith.constant 0 : index
    %0 = vector.load %arg1[%c0, %c0_0] : memref<8x128xf32, #tpu.memory_space<vmem>>, vector<8x128xf32>
    %c0_1 = arith.constant 0 : index
    %c0_2 = arith.constant 0 : index
    %1 = vector.load %arg2[%c0_1, %c0_2] : memref<1x128xf32, #tpu.memory_space<vmem>>, vector<1x128xf32>
    %2 = vector.broadcast %1 : vector<1x128xf32> to vector<8x128xf32>
    %3 = arith.mulf %0, %2 : vector<8x128xf32>
    %c0_3 = arith.constant 0 : index
    %c0_4 = arith.constant 0 : index
    %4 = vector.load %arg3[%c0_3, %c0_4] : memref<1x128xf32, #tpu.memory_space<vmem>>, vector<1x128xf32>
    %5 = vector.broadcast %4 : vector<1x128xf32> to vector<8x128xf32>
    %6 = arith.addf %3, %5 : vector<8x128xf32>
    %7 = arith.truncf %6 : vector<8x128xf32> to vector<8x128xbf16>
    %c0_5 = arith.constant 0 : index
    %c0_6 = arith.constant 0 : index
    %8 = vector.load %arg4[%c0_5, %c0_6] : memref<128x128xbf16, #tpu.memory_space<vmem>>, vector<128x128xbf16>
    %cst = arith.constant dense<0.000000e+00> : vector<8x128xf32>
    %9 = tpu.matmul %7, %8, %cst {dimension_numbers = #tpu.dot_dimension_numbers<[1], [0], [0], [1], [0, 0, 1, 1], [], []>} : vector<8x128xbf16>, vector<128x128xbf16>, vector<8x128xf32> -> vector<8x128xf32>
    %c0_7 = arith.constant 0 : index
    %c0_8 = arith.constant 0 : index
    %10 = vector.load %arg5[%c0_7, %c0_8] : memref<1x128xf32, #tpu.memory_space<vmem>>, vector<1x128xf32>
    %11 = vector.broadcast %10 : vector<1x128xf32> to vector<8x128xf32>
    %12 = arith.addf %9, %11 : vector<8x128xf32>
    %cst_9 = arith.constant 0.000000e+00 : f32
    %13 = vector.broadcast %cst_9 : f32 to vector<8x128xf32>
    %14 = arith.maximumf %12, %13 : vector<8x128xf32>
    %15 = arith.truncf %14 : vector<8x128xf32> to vector<8x128xbf16>
    %c0_10 = arith.constant 0 : index
    %c0_11 = arith.constant 0 : index
    %16 = vector.load %arg6[%c0_10, %c0_11] : memref<128x128xbf16, #tpu.memory_space<vmem>>, vector<128x128xbf16>
    %cst_12 = arith.constant dense<0.000000e+00> : vector<8x128xf32>
    %17 = tpu.matmul %15, %16, %cst_12 {dimension_numbers = #tpu.dot_dimension_numbers<[1], [0], [0], [1], [0, 0, 1, 1], [], []>} : vector<8x128xbf16>, vector<128x128xbf16>, vector<8x128xf32> -> vector<8x128xf32>
    %c0_13 = arith.constant 0 : index
    %c0_14 = arith.constant 0 : index
    %18 = vector.load %arg7[%c0_13, %c0_14] : memref<1x128xf32, #tpu.memory_space<vmem>>, vector<1x128xf32>
    %19 = vector.broadcast %18 : vector<1x128xf32> to vector<8x128xf32>
    %20 = arith.addf %17, %19 : vector<8x128xf32>
    %cst_15 = arith.constant 0.000000e+00 : f32
    %21 = vector.broadcast %cst_15 : f32 to vector<8x128xf32>
    %22 = arith.maximumf %20, %21 : vector<8x128xf32>
    %23 = arith.truncf %22 : vector<8x128xf32> to vector<8x128xbf16>
    %c0_16 = arith.constant 0 : index
    %c0_17 = arith.constant 0 : index
    %24 = vector.load %arg8[%c0_16, %c0_17] : memref<128x128xbf16, #tpu.memory_space<vmem>>, vector<128x128xbf16>
    %cst_18 = arith.constant dense<0.000000e+00> : vector<8x128xf32>
    %25 = tpu.matmul %23, %24, %cst_18 {dimension_numbers = #tpu.dot_dimension_numbers<[1], [0], [0], [1], [0, 0, 1, 1], [], []>} : vector<8x128xbf16>, vector<128x128xbf16>, vector<8x128xf32> -> vector<8x128xf32>
    %c0_19 = arith.constant 0 : index
    %c0_20 = arith.constant 0 : index
    %26 = vector.load %arg9[%c0_19, %c0_20] : memref<1x128xf32, #tpu.memory_space<vmem>>, vector<1x128xf32>
    %27 = vector.broadcast %26 : vector<1x128xf32> to vector<8x128xf32>
    %28 = arith.addf %25, %27 : vector<8x128xf32>
    %cst_21 = arith.constant 0.000000e+00 : f32
    %29 = vector.broadcast %cst_21 : f32 to vector<8x128xf32>
    %30 = arith.maximumf %28, %29 : vector<8x128xf32>
    %31 = arith.truncf %30 : vector<8x128xf32> to vector<8x128xbf16>
    %c0_22 = arith.constant 0 : index
    %c0_23 = arith.constant 0 : index
    %32 = vector.load %arg10[%c0_22, %c0_23] : memref<128x128xbf16, #tpu.memory_space<vmem>>, vector<128x128xbf16>
    %cst_24 = arith.constant dense<0.000000e+00> : vector<8x128xf32>
    %33 = tpu.matmul %31, %32, %cst_24 {dimension_numbers = #tpu.dot_dimension_numbers<[1], [0], [0], [1], [0, 0, 1, 1], [], []>} : vector<8x128xbf16>, vector<128x128xbf16>, vector<8x128xf32> -> vector<8x128xf32>
    %c0_25 = arith.constant 0 : index
    %c0_26 = arith.constant 0 : index
    %34 = vector.load %arg11[%c0_25, %c0_26] : memref<1x128xf32, #tpu.memory_space<vmem>>, vector<1x128xf32>
    %35 = vector.broadcast %34 : vector<1x128xf32> to vector<8x128xf32>
    %36 = arith.addf %33, %35 : vector<8x128xf32>
    %c0_27 = arith.constant 0 : index
    %c0_28 = arith.constant 0 : index
    %37 = vector.load %arg12[%c0_27, %c0_28] : memref<8x128xf32, #tpu.memory_space<vmem>>, vector<8x128xf32>
    tpu.vector_store %arg12[%c0_27, %c0_28], %36 {strides = array<i32>} : memref<8x128xf32, #tpu.memory_space<vmem>>, vector<8x128xf32>,
    return
  }
  func.func @transform_0(%arg0: i32) -> (i32, i32) {
    %c0_i32 = arith.constant 0 : i32
    %c0_i32_0 = arith.constant 0 : i32
    return %arg0, %c0_i32 : i32, i32
  }
  func.func @transform_1(%arg0: i32) -> (i32, i32) {
    %c0_i32 = arith.constant 0 : i32
    %c0_i32_0 = arith.constant 0 : i32
    %c0_i32_1 = arith.constant 0 : i32
    return %c0_i32, %c0_i32_0 : i32, i32
  }
  func.func @transform_2(%arg0: i32) -> (i32, i32) {
    %c0_i32 = arith.constant 0 : i32
    %c0_i32_0 = arith.constant 0 : i32
    %c0_i32_1 = arith.constant 0 : i32
    return %c0_i32, %c0_i32_0 : i32, i32
  }
  func.func @transform_3(%arg0: i32) -> (i32, i32) {
    %c0_i32 = arith.constant 0 : i32
    %c0_i32_0 = arith.constant 0 : i32
    %c0_i32_1 = arith.constant 0 : i32
    return %c0_i32, %c0_i32_0 : i32, i32
  }
  func.func @transform_4(%arg0: i32) -> (i32, i32) {
    %c0_i32 = arith.constant 0 : i32
    %c0_i32_0 = arith.constant 0 : i32
    %c0_i32_1 = arith.constant 0 : i32
    return %c0_i32, %c0_i32_0 : i32, i32
  }
  func.func @transform_5(%arg0: i32) -> (i32, i32) {
    %c0_i32 = arith.constant 0 : i32
    %c0_i32_0 = arith.constant 0 : i32
    %c0_i32_1 = arith.constant 0 : i32
    return %c0_i32, %c0_i32_0 : i32, i32
  }
  func.func @transform_6(%arg0: i32) -> (i32, i32) {
    %c0_i32 = arith.constant 0 : i32
    %c0_i32_0 = arith.constant 0 : i32
    %c0_i32_1 = arith.constant 0 : i32
    return %c0_i32, %c0_i32_0 : i32, i32
  }
  func.func @transform_7(%arg0: i32) -> (i32, i32) {
    %c0_i32 = arith.constant 0 : i32
    %c0_i32_0 = arith.constant 0 : i32
    %c0_i32_1 = arith.constant 0 : i32
    return %c0_i32, %c0_i32_0 : i32, i32
  }
  func.func @transform_8(%arg0: i32) -> (i32, i32) {
    %c0_i32 = arith.constant 0 : i32
    %c0_i32_0 = arith.constant 0 : i32
    %c0_i32_1 = arith.constant 0 : i32
    return %c0_i32, %c0_i32_0 : i32, i32
  }
  func.func @transform_9(%arg0: i32) -> (i32, i32) {
    %c0_i32 = arith.constant 0 : i32
    %c0_i32_0 = arith.constant 0 : i32
    %c0_i32_1 = arith.constant 0 : i32
    return %c0_i32, %c0_i32_0 : i32, i32
  }
  func.func @transform_10(%arg0: i32) -> (i32, i32) {
    %c0_i32 = arith.constant 0 : i32
    %c0_i32_0 = arith.constant 0 : i32
    %c0_i32_1 = arith.constant 0 : i32
    return %c0_i32, %c0_i32_0 : i32, i32
  }
  func.func @transform_11(%arg0: i32) -> (i32, i32) {
    %c0_i32 = arith.constant 0 : i32
    %c0_i32_0 = arith.constant 0 : i32
    return %arg0, %c0_i32 : i32, i32
  }
}

</mosaic_0001>

<bundles_post_ra>
// kernel: tpu_custom_call.1
= control target key start
LH: loop header
LB: loop body
LE: loop exit
PB: predicated region body
PF: predicated region fallthrough
CT: control target
= control target key end

     0   :  { %16 = vsyncpa [#allocation3], 0  ;;  %s1140_s0 = inlined_call_operand.hbm [shape: f32[8,128], index: 0, kind: input, shape index: {}]   ;;  %s1141_s1 = inlined_call_operand.vmem [shape: f32[1,128], index: 1, kind: input, shape index: {}]   ;;  %s1142_s2 = inlined_call_operand.vmem [shape: f32[1,128], index: 2, kind: input, shape index: {}]   ;;  %s1143_s3 = inlined_call_operand.hbm [shape: bf16[128,128], index: 3, kind: input, shape index: {}]   ;;  %s1144_s4 = inlined_call_operand.vmem [shape: f32[1,128], index: 4, kind: input, shape index: {}]   ;;  %s1145_s5 = inlined_call_operand.hbm [shape: bf16[128,128], index: 5, kind: input, shape index: {}]   ;;  %s1146_s6 = inlined_call_operand.vmem [shape: f32[1,128], index: 6, kind: input, shape index: {}]   ;;  %s1147_s7 = inlined_call_operand.hbm [shape: bf16[128,128], index: 7, kind: input, shape index: {}]   ;;  %s1148_s8 = inlined_call_operand.vmem [shape: f32[1,128], index: 8, kind: input, shape index: {}]   ;;  %s1149_s9 = inlined_call_operand.hbm [shape: bf16[128,128], index: 9, kind: input, shape index: {}]   ;;  %s1150_s10 = inlined_call_operand.vmem [shape: f32[1,128], index: 10, kind: input, shape index: {}]   ;;  %s1151_s11 = inlined_call_operand.hbm [shape: f32[8,128], index: 11, kind: output, shape index: {}]  }
   0x1   :  { %17 = vsyncpa [#allocation6], 0 }
   0x2   :  { %18 = vsyncpa [#allocation9], 0 }
   0x3   :  { %19 = vsyncpa [#allocation4], 0  ;;  %s928_s17 = smov [#allocation5]   ;;  %s788_s21 = scalar_lea.hbm %s1143_s3, 1024 }
   0x4   :  { %s39_s18 = sshll.u32 %s928_s17, 4  ;;  %p789_p0 = scmp.ne.s32.totalorder %s1143_s3, %s788_s21  ;;  %s40_s18 = int_to_ptr.vmem [resolvable:$true] %s39_s18 }
   0x5   :  { %p792_p1 = scmp.lt.u32.totalorder %s788_s21, %s1143_s3 }
   0x7   :  { %p794_p2 = pnand %p792_p1, %p789_p0 }
   0x9   :  { %797 = shalt.err (!%p794_p2)
}
   0xa   :  { %s798_s26 = scalar_lea.vmem %s40_s18, 1024  ;;  %p803_p4 = scmp.lt.s32.totalorder %s40_s18, %s40_s18 }
   0xb   :  { %p799_p3 = scmp.ne.s32.totalorder %s40_s18, %s798_s26  ;;  %p804_p5 = scmp.lt.s32.totalorder %s798_s26, %s798_s26 }
   0xd   :  { %p805_p6 = por %p804_p5, %p803_p4 }
   0xf   :  { %p806_p7 = pnand %p805_p6, %p799_p3 }
  0x11   :  { %809 = shalt.err (!%p806_p7)
}
  0x12   :  { %s929_s27 = smov 64   ;;  %s930_s28 = smov 4  }
  0x13   :  { %45 = dma.hbm_to_vmem [thread:$0]  %s1143_s3, 1024, %s40_s18, [#allocation6], %s929_s27, %s929_s27, %s930_s28  }
  0x14   :  { %s931_s12 = smov [#allocation8]   ;;  %s932_s14 = smov [#allocation2]  }
  0x15   :  { %s67_s13 = sshll.u32 %s931_s12, 4  ;;  %s26_s15 = sshll.u32 %s932_s14, 4  ;;  %s68_s13 = int_to_ptr.vmem [resolvable:$true] %s67_s13  ;;  %s27_s15 = int_to_ptr.vmem [resolvable:$true] %s26_s15 }
  0x16   :  { %s810_s19 = scalar_lea.hbm %s1147_s7, 1024 }
  0x17   :  { %p811_p8 = scmp.ne.s32.totalorder %s1147_s7, %s810_s19  ;;  %p814_p9 = scmp.lt.u32.totalorder %s810_s19, %s1147_s7 }
  0x19   :  { %p816_p10 = pnand %p814_p9, %p811_p8 }
  0x1b   :  { %819 = shalt.err (!%p816_p10)
}
  0x1c   :  { %s820_s3 = scalar_lea.vmem %s68_s13, 1024  ;;  %p825_p12 = scmp.lt.s32.totalorder %s68_s13, %s68_s13 }
  0x1d   :  { %p821_p11 = scmp.ne.s32.totalorder %s68_s13, %s820_s3  ;;  %p826_p13 = scmp.lt.s32.totalorder %s820_s3, %s820_s3 }
  0x1f   :  { %p827_p0 = por %p826_p13, %p825_p12 }
  0x21   :  { %p828_p1 = pnand %p827_p0, %p821_p11 }
  0x23   :  { %831 = shalt.err (!%p828_p1)
}
  0x24   :  { %73 = dma.hbm_to_vmem [thread:$0]  %s1147_s7, 1024, %s68_s13, [#allocation9], %s929_s27, %s929_s27, %s930_s28  }
  0x25   :  { %s832_s29 = scalar_lea.hbm %s1140_s0, 128 }
  0x26   :  { %p833_p2 = scmp.ne.s32.totalorder %s1140_s0, %s832_s29  ;;  %p836_p3 = scmp.lt.u32.totalorder %s832_s29, %s1140_s0 }
  0x28   :  { %p838_p4 = pnand %p836_p3, %p833_p2 }
  0x2a   :  { %841 = shalt.err (!%p838_p4)
}
  0x2b   :  { %s842_s17 = scalar_lea.vmem %s27_s15, 128  ;;  %p847_p6 = scmp.lt.s32.totalorder %s27_s15, %s27_s15 }
  0x2c   :  { %p843_p5 = scmp.ne.s32.totalorder %s27_s15, %s842_s17  ;;  %p848_p7 = scmp.lt.s32.totalorder %s842_s17, %s842_s17 }
  0x2e   :  { %p849_p8 = por %p848_p7, %p847_p6 }
  0x30   :  { %p850_p9 = pnand %p849_p8, %p843_p5 }
  0x32   :  { %853 = shalt.err (!%p850_p9)
}
  0x33   :  { %29 = dma.hbm_to_vmem [thread:$0]  %s1140_s0, 128, %s27_s15, [#allocation3]  }
  0x34   :  { %s933_s19 = smov [#allocation7]   ;;  %s934_s21 = smov [#allocation10]  }
  0x35   :  { %s53_s20 = sshll.u32 %s933_s19, 4  ;;  %s81_s22 = sshll.u32 %s934_s21, 4  ;;  %s54_s20 = int_to_ptr.vmem [resolvable:$true] %s53_s20  ;;  %s82_s22 = int_to_ptr.vmem [resolvable:$true] %s81_s22 }
  0x36   :  { %s854_s18 = scalar_lea.hbm %s1145_s5, 1024 }
  0x37   :  { %p855_p10 = scmp.ne.s32.totalorder %s1145_s5, %s854_s18  ;;  %p858_p11 = scmp.lt.u32.totalorder %s854_s18, %s1145_s5 }
  0x39   :  { %p860_p12 = pnand %p858_p11, %p855_p10 }
  0x3b   :  { %863 = shalt.err (!%p860_p12)
}
  0x3c   :  { %s864_s0 = scalar_lea.vmem %s54_s20, 1024  ;;  %p869_p0 = scmp.lt.s32.totalorder %s54_s20, %s54_s20 }
  0x3d   :  { %p865_p13 = scmp.ne.s32.totalorder %s54_s20, %s864_s0  ;;  %p870_p1 = scmp.lt.s32.totalorder %s864_s0, %s864_s0 }
  0x3f   :  { %p871_p2 = por %p870_p1, %p869_p0 }
  0x41   :  { %p872_p3 = pnand %p871_p2, %p865_p13 }
  0x43   :  { %875 = shalt.err (!%p872_p3)
}
  0x44   :  { %59 = dma.hbm_to_vmem [thread:$0]  %s1145_s5, 1024, %s54_s20, [#allocation6], %s929_s27, %s929_s27, %s930_s28  }
  0x45   :  { %s876_s16 = scalar_lea.hbm %s1149_s9, 1024 }
  0x46   :  { %p877_p4 = scmp.ne.s32.totalorder %s1149_s9, %s876_s16  ;;  %p880_p5 = scmp.lt.u32.totalorder %s876_s16, %s1149_s9 }
  0x48   :  { %p882_p6 = pnand %p880_p5, %p877_p4 }
  0x4a   :  { %885 = shalt.err (!%p882_p6)
}
  0x4b   :  { %s886_s21 = scalar_lea.vmem %s82_s22, 1024  ;;  %p891_p8 = scmp.lt.s32.totalorder %s82_s22, %s82_s22 }
  0x4c   :  { %p887_p7 = scmp.ne.s32.totalorder %s82_s22, %s886_s21  ;;  %p892_p9 = scmp.lt.s32.totalorder %s886_s21, %s886_s21 }
  0x4e   :  { %p893_p10 = por %p892_p9, %p891_p8 }
  0x50   :  { %p894_p11 = pnand %p893_p10, %p887_p7 }
  0x52   :  { %897 = shalt.err (!%p894_p11)
}
  0x53   :  { %87 = dma.hbm_to_vmem [thread:$0]  %s1149_s9, 1024, %s82_s22, [#allocation9], %s929_s27, %s929_s27, %s930_s28  }
  0x54   :  { %920 = dma.done.wait [#allocation3], 128  }
  0x55   :  { %921 = vsyncadd [#allocation3], 4294967168 }
  0x56   :  { %922 = dma.done.wait [#allocation6], 2048  }
  0x57   :  { %923 = vsyncadd [#allocation6], 4294965248 }
  0x58   :  { %924 = dma.done.wait [#allocation9], 2048  }
  0x59   :  { %925 = vsyncadd [#allocation9], 4294965248  ;;  %v935_v0 = vmov 0.0   ;;  %vm936_vm0 = vmmov 0   ;;  %v756_v1 = vld [vmem:[#allocation5] sm:$0xff]   ;;  %v757_v2 = vld [vmem:[#allocation5 + $0x8] sm:$0xff]  }
  0x5a   :  { %666 = vmatprep.subr.bf16.mxu0 %v935_v0  ;;  %682 = vmatprep.mubr.msk.bf16.mxu0 %vm936_vm0, %v935_v0  ;;  %v758_v3 = vld [vmem:[#allocation5 + $0x10] sm:$0xff]   ;;  %v764_v4 = vld [vmem:[#allocation7] sm:$0xff]   ;;  %v759_v5 = vld [vmem:[#allocation5 + $0x18] sm:$0xff]   ;;  %s937_s25 = smov [#allocation11]  }
  0x5b   :  { %686 = vmatprep.subr.bf16.mxu1 %v935_v0  ;;  %702 = vmatprep.mubr.msk.bf16.mxu1 %vm936_vm0, %v935_v0  ;;  %v765_v6 = vld [vmem:[#allocation7 + $0x8] sm:$0xff]   ;;  %v760_v7 = vld [vmem:[#allocation5 + $0x20] sm:$0xff]   ;;  %v766_v8 = vld [vmem:[#allocation7 + $0x10] sm:$0xff]   ;;  %s581_s26 = sshll.u32 %s937_s25, 4  ;;  %s582_s26 = int_to_ptr.vmem [resolvable:$true] %s581_s26 }
  0x5c   :  { %667 = vmatpush3.bf16.msra.mxu0 %v756_v1  ;;  %687 = vmatpush3.bf16.msra.mxu1 %v764_v4  ;;  %v761_v9 = vld [vmem:[#allocation5 + $0x28] sm:$0xff]   ;;  %v106_v10 = vld [vmem:[#allocation2] sm:$0xff]  ;;  %v762_v13 = vld [vmem:[#allocation5 + $0x30] sm:$0xff]   ;;  %p903_p13 = scmp.lt.s32.totalorder %s582_s26, %s582_s26 }
  0x5d   :  { %668 = vmatprep.subr.bf16.mxu0 %v935_v0  ;;  %688 = vmatprep.subr.bf16.mxu1 %v935_v0  ;;  %v592_v11 = vld [vmem:[%s1141_s1] ss:$0 sm:$0xff]  ;;  %v768_v16 = vld [vmem:[#allocation7 + $0x20] sm:$0xff]   ;;  %v769_v19 = vld [vmem:[#allocation7 + $0x28] sm:$0xff]  }
  0x5e   :  { %v767_v12 = vld [vmem:[#allocation7 + $0x18] sm:$0xff]   ;;  %v114_v15 = vmul.f32 %v592_v11, %v106_v10  ;;  %v770_v21 = vld [vmem:[#allocation7 + $0x30] sm:$0xff]   ;;  %v772_v23 = vld [vmem:[#allocation8] sm:$0xff]  }
  0x5f   :  { %v593_v14 = vld [vmem:[%s1142_s2] ss:$0 sm:$0xff]  ;;  %v773_v24 = vld [vmem:[#allocation8 + $0x8] sm:$0xff]   ;;  %v774_v25 = vld [vmem:[#allocation8 + $0x10] sm:$0xff]  }
  0x60   :  { %669 = vmatpush3.bf16.msra.mxu0 %v757_v2  ;;  %689 = vmatpush3.bf16.msra.mxu1 %v765_v6  ;;  %v763_v17 = vld [vmem:[#allocation5 + $0x38] sm:$0xff]   ;;  %v122_v18 = vadd.f32 %v593_v14, %v114_v15  ;;  %v776_v27 = vld [vmem:[#allocation8 + $0x20] sm:$0xff]   ;;  %v777_v28 = vld [vmem:[#allocation8 + $0x28] sm:$0xff]  }
  0x61   :  { %670 = vmatprep.subr.bf16.mxu0 %v935_v0  ;;  %690 = vmatprep.subr.bf16.mxu1 %v935_v0  ;;  %v771_v22 = vld [vmem:[#allocation7 + $0x38] sm:$0xff]   ;;  %v778_v37 = vld [vmem:[#allocation8 + $0x30] sm:$0xff]   ;;  %v780_v39 = vld [vmem:[#allocation10] sm:$0xff]  }
  0x62   :  { %v123_v20 = vpack.c.bf16 %v122_v18, %v122_v18  ;;  %v775_v26 = vld [vmem:[#allocation8 + $0x18] sm:$0xff]   ;;  %v781_v40 = vld [vmem:[#allocation10 + $0x8] sm:$0xff]   ;;  %v782_v41 = vld [vmem:[#allocation10 + $0x10] sm:$0xff]  }
  0x63   :  { %v594_v29 = vld [vmem:[%s1144_s4] ss:$0 sm:$0xff]  ;;  %v784_v43 = vld [vmem:[#allocation10 + $0x20] sm:$0xff]   ;;  %v785_v44 = vld [vmem:[#allocation10 + $0x28] sm:$0xff]  }
  0x64   :  { %671 = vmatpush3.bf16.msra.mxu0 %v758_v3  ;;  %691 = vmatpush3.bf16.msra.mxu1 %v766_v8  ;;  %v779_v38 = vld [vmem:[#allocation8 + $0x38] sm:$0xff]   ;;  %v786_v53 = vld [vmem:[#allocation10 + $0x30] sm:$0xff]  }
  0x65   :  { %672 = vmatprep.subr.bf16.mxu0 %v935_v0  ;;  %692 = vmatprep.subr.bf16.mxu1 %v935_v0  ;;  %v783_v42 = vld [vmem:[#allocation10 + $0x18] sm:$0xff]  }
  0x66   :  { %v603_v45 = vld [vmem:[%s1146_s6] ss:$0 sm:$0xff] }
  0x67   :  { %v787_v54 = vld [vmem:[#allocation10 + $0x38] sm:$0xff]  }
  0x68   :  { %673 = vmatpush3.bf16.msra.mxu0 %v759_v5  ;;  %693 = vmatpush3.bf16.msra.mxu1 %v767_v12  ;;  %v612_v55 = vld [vmem:[%s1148_s8] ss:$0 sm:$0xff]  ;;  %s898_s8 = scalar_lea.vmem %s582_s26, 128 }
  0x69   :  { %674 = vmatprep.subr.bf16.mxu0 %v935_v0  ;;  %694 = vmatprep.subr.bf16.mxu1 %v935_v0  ;;  %v621_v63 = vld [vmem:[%s1150_s10] ss:$0 sm:$0xff]  ;;  %p899_p12 = scmp.ne.s32.totalorder %s582_s26, %s898_s8  ;;  %p904_p0 = scmp.lt.s32.totalorder %s898_s8, %s898_s8 }
  0x6b   :  { %p905_p1 = por %p904_p0, %p903_p13 }
  0x6c   :  { %675 = vmatpush3.bf16.msra.mxu0 %v760_v7  ;;  %695 = vmatpush3.bf16.msra.mxu1 %v768_v16 }
  0x6d   :  { %676 = vmatprep.subr.bf16.mxu0 %v935_v0  ;;  %696 = vmatprep.subr.bf16.mxu1 %v935_v0  ;;  %p906_p2 = pnand %p905_p1, %p899_p12 }
  0x70   :  { %677 = vmatpush3.bf16.msra.mxu0 %v761_v9  ;;  %697 = vmatpush3.bf16.msra.mxu1 %v769_v19 }
  0x71   :  { %678 = vmatprep.subr.bf16.mxu0 %v935_v0  ;;  %698 = vmatprep.subr.bf16.mxu1 %v935_v0 }
  0x74   :  { %679 = vmatpush3.bf16.msra.mxu0 %v762_v13  ;;  %699 = vmatpush3.bf16.msra.mxu1 %v770_v21 }
  0x75   :  { %680 = vmatprep.subr.bf16.mxu0 %v935_v0  ;;  %700 = vmatprep.subr.bf16.mxu1 %v935_v0 }
  0x78   :  { %681 = vmatpush3.bf16.msra.mxu0 %v763_v17  ;;  %701 = vmatpush3.bf16.msra.mxu1 %v771_v22 }
  0x79   :  { %706 = vmatprep.subr.bf16.mxu0 %v935_v0  ;;  %726 = vmatprep.subr.bf16.mxu1 %v935_v0 }
  0x7b   :  { %683 = vmatmul.mubr.bf16.vlgmr.msra.gmra.mrb[0].mxu0 %v123_v20 }
  0x7c   :  { %722 = vmatprep.mubr.msk.bf16.mxu0 %vm936_vm0, %v935_v0  ;;  %707 = vmatpush3.bf16.msra.mxu0 %v772_v23 }
  0x7d   :  { %708 = vmatprep.subr.bf16.mxu0 %v935_v0 }
  0x80   :  { %709 = vmatpush3.bf16.msra.mxu0 %v773_v24 }
  0x81   :  { %710 = vmatprep.subr.bf16.mxu0 %v935_v0 }
  0x84   :  { %711 = vmatpush3.bf16.msra.mxu0 %v774_v25 }
  0x85   :  { %712 = vmatprep.subr.bf16.mxu0 %v935_v0 }
  0x88   :  { %713 = vmatpush3.bf16.msra.mxu0 %v775_v26 }
  0x89   :  { %714 = vmatprep.subr.bf16.mxu0 %v935_v0 }
  0x8c   :  { %715 = vmatpush3.bf16.msra.mxu0 %v776_v27 }
  0x8d   :  { %716 = vmatprep.subr.bf16.mxu0 %v935_v0 }
  0x90   :  { %717 = vmatpush3.bf16.msra.mxu0 %v777_v28 }
  0x91   :  { %718 = vmatprep.subr.bf16.mxu0 %v935_v0 }
  0x94   :  { %719 = vmatpush3.bf16.msra.mxu0 %v778_v37 }
  0x95   :  { %720 = vmatprep.subr.bf16.mxu0 %v935_v0 }
  0x98   :  { %721 = vmatpush3.bf16.msra.mxu0 %v779_v38 }
 0x14e   :  { %v229_v30 = vpop.f32.mrb[0].mxu0 }
 0x14f   :  { %v230_v31 = vadd.f32 %v594_v29, %v229_v30  ;;  %v684_v32 = vpop.f32.mrb[1].mxu0 }
 0x150   :  { %v232_v33 = vpop.f32.mrb[2].mxu0 }
 0x151   :  { %v235_v34 = vmax.f32 %v230_v31, 0.0  ;;  %v685_v35 = vpop.f32.mrb[3].mxu0 }
 0x153   :  { %v236_v36 = vpack.c.bf16 %v235_v34, %v235_v34 }
 0x155   :  { %703 = vmatmul.mubr.bf16.vlgmr.msra.gmra.mrb[0].mxu1 %v236_v36 }
 0x156   :  { %742 = vmatprep.mubr.msk.bf16.mxu1 %vm936_vm0, %v935_v0  ;;  %727 = vmatpush3.bf16.msra.mxu1 %v780_v39 }
 0x157   :  { %728 = vmatprep.subr.bf16.mxu1 %v935_v0 }
 0x15a   :  { %729 = vmatpush3.bf16.msra.mxu1 %v781_v40 }
 0x15b   :  { %730 = vmatprep.subr.bf16.mxu1 %v935_v0 }
 0x15e   :  { %731 = vmatpush3.bf16.msra.mxu1 %v782_v41 }
 0x15f   :  { %732 = vmatprep.subr.bf16.mxu1 %v935_v0 }
 0x162   :  { %733 = vmatpush3.bf16.msra.mxu1 %v783_v42 }
 0x163   :  { %734 = vmatprep.subr.bf16.mxu1 %v935_v0 }
 0x166   :  { %735 = vmatpush3.bf16.msra.mxu1 %v784_v43 }
 0x167   :  { %736 = vmatprep.subr.bf16.mxu1 %v935_v0 }
 0x16a   :  { %737 = vmatpush3.bf16.msra.mxu1 %v785_v44 }
 0x16b   :  { %738 = vmatprep.subr.bf16.mxu1 %v935_v0 }
 0x16e   :  { %739 = vmatpush3.bf16.msra.mxu1 %v786_v53 }
 0x16f   :  { %740 = vmatprep.subr.bf16.mxu1 %v935_v0 }
 0x172   :  { %741 = vmatpush3.bf16.msra.mxu1 %v787_v54 }
 0x228   :  { %v342_v46 = vpop.f32.mrb[0].mxu1 }
 0x229   :  { %v343_v47 = vadd.f32 %v603_v45, %v342_v46  ;;  %v704_v48 = vpop.f32.mrb[1].mxu1 }
 0x22a   :  { %v345_v49 = vpop.f32.mrb[2].mxu1 }
 0x22b   :  { %v348_v50 = vmax.f32 %v343_v47, 0.0  ;;  %v705_v51 = vpop.f32.mrb[3].mxu1 }
 0x22d   :  { %v349_v52 = vpack.c.bf16 %v348_v50, %v348_v50 }
 0x22f   :  { %723 = vmatmul.mubr.bf16.vlgmr.msra.gmra.mrb[4].mxu0 %v349_v52 }
 0x302   :  { %v455_v56 = vpop.f32.mrb[4].mxu0 }
 0x303   :  { %v456_v57 = vadd.f32 %v612_v55, %v455_v56  ;;  %v724_v58 = vpop.f32.mrb[5].mxu0 }
 0x304   :  { %v458_v59 = vpop.f32.mrb[6].mxu0 }
 0x305   :  { %v461_v60 = vmax.f32 %v456_v57, 0.0  ;;  %v725_v61 = vpop.f32.mrb[7].mxu0 }
 0x307   :  { %v462_v62 = vpack.c.bf16 %v461_v60, %v461_v60 }
 0x309   :  { %743 = vmatmul.mubr.bf16.vlgmr.msra.gmra.mrb[4].mxu1 %v462_v62 }
 0x3dc   :  { %v568_v0 = vpop.f32.mrb[4].mxu1 }
 0x3dd   :  { %v569_v1 = vadd.f32 %v621_v63, %v568_v0  ;;  %v744_v2 = vpop.f32.mrb[5].mxu1 }
 0x3de   :  { %v571_v3 = vpop.f32.mrb[6].mxu1 }
 0x3df   :  { %574 = vst [vmem:[#allocation11] sm:$0xff] %v569_v1  ;;  %v745_v4 = vpop.f32.mrb[7].mxu1 }
 0x3e0   :  { %909 = shalt.err (!%p906_p2)
}
 0x3e1   :  { %s910_s10 = scalar_lea.hbm %s1151_s11, 128 }
 0x3e2   :  { %p911_p3 = scmp.ne.s32.totalorder %s1151_s11, %s910_s10  ;;  %p914_p4 = scmp.lt.u32.totalorder %s910_s10, %s1151_s11 }
 0x3e4   :  { %p916_p5 = pnand %p914_p4, %p911_p3 }
 0x3e6   :  { %919 = shalt.err (!%p916_p5)
}
 0x3e7   :  { %584 = dma.vmem_to_hbm [thread:$0]  %s582_s26, 128, %s1151_s11, [#allocation4]  }
 0x3e8   :  { %926 = dma.done.wait [#allocation4], 128  }
 0x3e9   :  { %927 = vsyncadd [#allocation4], 4294967168 }
 0x3ea   :  { %588 = vsyncpa [#allocation3], 1 }
 0x3eb   :  { %589 = vsyncpa [#allocation6], 1 }
 0x3ec   :  { %590 = vsyncpa [#allocation9], 1 }
 0x3ed   :  { %591 = vsyncpa [#allocation4], 1 }

</bundles_post_ra>
